<compile_context>
chip_gen: v7x
topology: tpu7x:2x2x1
jax: 0.10.0
libtpu: 0.0.40
codegen_flags: <defaults>
</compile_context>

<pallas_src>
import jax
import jax.numpy as jnp
from jax.experimental import pallas as pl
from jax.experimental.pallas import tpu as pltpu

_LANES = 128


def _conv1x1_prelu_kernel(w_ref, b_ref, a_ref, x_ref, o_ref):
    # w_ref: (C*C,) f32 in SMEM, row-major: w[c_out * C + c_in]   (resident)
    # b_ref: (C,)   f32 in SMEM, conv bias                        (resident)
    # a_ref: (C,)   f32 in SMEM, PReLU per-channel slope          (resident)
    # x_ref: (C, S_tile, 128)  input tile: pixels fill sublanes + lanes
    # o_ref: (C, S_tile, 128)  output tile
    C = x_ref.shape[0]
    for co in range(C):
        # f32 accumulation of the C-term channel mix (scalar * dense slab FMAs).
        # The astype is a no-op for f32 inputs; for bf16 inputs it upcasts
        # (safe on v5e which lacks bf16 VALU).
        acc = w_ref[co * C] * x_ref[0].astype(jnp.float32)
        for ci in range(1, C):
            acc = acc + w_ref[co * C + ci] * x_ref[ci].astype(jnp.float32)
        y = acc + b_ref[co]
        o_ref[co] = jnp.where(y > 0.0, y, a_ref[co] * y).astype(o_ref.dtype)


def _pick_s_tile(S, N, max_s_tile):
    """Pixel-row tile size (each row = 128 pixels).

    * Full extent if it fits (sub-8 full extents are legal BlockSpec shapes).
    * If the whole grid would otherwise be a single step (N == 1), split the
      row axis into >=2 tiles so v7x megacore sharding has work for both TCs.
    * Otherwise cap at max_s_tile (multiple of 8); the partial last block is
      handled by the cdiv grid, no padding required.
    """
    if S <= max_s_tile:
        if N == 1 and S >= 16:
            return ((S + 1) // 2 + 7) // 8 * 8   # >=2 tiles, multiple of 8
        return S                                  # full extent
    return max_s_tile                             # multiple of 8 by construction


def conv1x1_prelu(x_nchw, weight, bias, alpha, *, max_pixels_per_tile=262144):
    """x_nchw: (N, C, H, W); weight: (C, C, 1, 1); bias: (C,); alpha: (C,) or (1,)."""
    N, C, H, W = x_nchw.shape
    HW = H * W
    hw_pad = pl.cdiv(HW, _LANES) * _LANES

    x_flat = x_nchw.reshape(N, C, HW)              # free reshape, stays NCHW
    if hw_pad != HW:
        # TODO(synk): handle the H*W % 128 remainder with an in-kernel masked
        # tail instead of a padded copy (rare path).
        x_flat = jnp.pad(x_flat, ((0, 0), (0, 0), (0, hw_pad - HW)))

    S = hw_pad // _LANES
    x4 = x_flat.reshape(N, C, S, _LANES)           # pixels fill sublanes + lanes

    max_s_tile = max(8, (max_pixels_per_tile // _LANES) // 8 * 8)
    s_tile = _pick_s_tile(S, N, max_s_tile)
    grid = (N, pl.cdiv(S, s_tile))

    # Tiny parameters as flat f32 SMEM scalars (no 2-D SMEM padding).
    w_flat = weight.reshape(C * C).astype(jnp.float32)        # w[co * C + ci]
    b_vec = bias.reshape(C).astype(jnp.float32)
    a_vec = jnp.broadcast_to(alpha.astype(jnp.float32).reshape(-1), (C,))

    out = pl.pallas_call(
        _conv1x1_prelu_kernel,
        out_shape=jax.ShapeDtypeStruct((N, C, S, _LANES), x_nchw.dtype),
        grid=grid,
        in_specs=[
            pl.BlockSpec(memory_space=pltpu.MemorySpace.SMEM),          # weight
            pl.BlockSpec(memory_space=pltpu.MemorySpace.SMEM),          # bias
            pl.BlockSpec(memory_space=pltpu.MemorySpace.SMEM),          # alpha
            pl.BlockSpec((None, C, s_tile, _LANES), lambda n, s: (n, 0, s, 0)),
        ],
        out_specs=pl.BlockSpec((None, C, s_tile, _LANES), lambda n, s: (n, 0, s, 0)),
        compiler_params=pltpu.CompilerParams(
            dimension_semantics=("parallel", "parallel"),
            vmem_limit_bytes=32 * 1024 * 1024,     # conservative for v7x (64 MiB phys)
        ),
    )(w_flat, b_vec, a_vec, x4)

    out = out.reshape(N, C, hw_pad)
    if hw_pad != HW:
        out = out[:, :, :HW]
    return out.reshape(N, C, H, W)


def _reference(x_nchw, weight, bias, alpha):
    # Pure-JAX reference for the same math (1x1 conv + per-channel PReLU), NCHW.
    N, C, H, W = x_nchw.shape
    w = weight.reshape(C, C)
    y = jnp.einsum('oc,nchw->nohw', w, x_nchw) + bias.reshape(1, C, 1, 1)
    a = jnp.broadcast_to(alpha.reshape(-1), (C,)).reshape(1, C, 1, 1)
    return jnp.where(y > 0, y, a * y)


if __name__ == "__main__":
    key = jax.random.PRNGKey(0)
    n_feats = 4
    N, H, W = 2, 16, 16

    k_x, k_w, k_b = jax.random.split(key, 3)
    x = jax.random.normal(k_x, (N, n_feats, H, W), dtype=jnp.float32)
    # Deterministic synthetic parameters (shapes match nn.Conv2d / nn.PReLU).
    weight = jax.random.normal(k_w, (n_feats, n_feats, 1, 1), dtype=jnp.float32) * 0.1
    bias = jax.random.normal(k_b, (n_feats,), dtype=jnp.float32) * 0.1
    alpha = jnp.full((n_feats,), 0.25, dtype=jnp.float32)  # PyTorch PReLU default init

    out = conv1x1_prelu(x, weight, bias, alpha)
    out = jax.block_until_ready(out)

    ref = _reference(x, weight, bias, alpha)
    assert out.shape == (N, n_feats, H, W)
    assert jnp.allclose(out, ref, atol=1e-5, rtol=1e-5), "mismatch vs reference"

    print("KERNEL_OK")
</pallas_src>

<mosaic_0001>
module attributes {stable_mosaic.version = 11 : i64} {
  func.func @_conv1x1_prelu_kernel(%arg0: i32, %arg1: i32, %arg2: memref<16xf32, #tpu.memory_space<smem>>, %arg3: memref<4xf32, #tpu.memory_space<smem>>, %arg4: memref<4xf32, #tpu.memory_space<smem>>, %arg5: memref<1x4x2x128xf32, #tpu.memory_space<vmem>>, %arg6: memref<1x4x2x128xf32, #tpu.memory_space<vmem>>) attributes {dimension_semantics = [#tpu.dimension_semantics<parallel>, #tpu.dimension_semantics<parallel>], iteration_bounds = array<i64: 2, 1>, scalar_prefetch = 0 : i64, scratch_operands = 0 : i64, tpu.core_type = #tpu.core_type<tc>, window_params = [{transform_indices = @transform_0, window_bounds = array<i64: 16>}, {transform_indices = @transform_1, window_bounds = array<i64: 4>}, {transform_indices = @transform_2, window_bounds = array<i64: 4>}, {transform_indices = @transform_3, window_bounds = array<i64: 1, 4, 2, 128>}, {transform_indices = @transform_4, window_bounds = array<i64: 1, 4, 2, 128>}]} {
    %c0 = arith.constant 0 : index
    %0 = memref.load %arg2[%c0] : memref<16xf32, #tpu.memory_space<smem>>
    %c0_0 = arith.constant 0 : index
    %c0_1 = arith.constant 0 : index
    %c0_2 = arith.constant 0 : index
    %c0_3 = arith.constant 0 : index
    %1 = vector.load %arg5[%c0_0, %c0_1, %c0_2, %c0_3] : memref<1x4x2x128xf32, #tpu.memory_space<vmem>>, vector<1x1x2x128xf32>
    %2 = vector.shape_cast %1 : vector<1x1x2x128xf32> to vector<2x128xf32>
    %3 = vector.broadcast %0 : f32 to vector<2x128xf32>
    %4 = arith.mulf %3, %2 : vector<2x128xf32>
    %c1 = arith.constant 1 : index
    %5 = memref.load %arg2[%c1] : memref<16xf32, #tpu.memory_space<smem>>
    %c0_4 = arith.constant 0 : index
    %c1_5 = arith.constant 1 : index
    %c0_6 = arith.constant 0 : index
    %c0_7 = arith.constant 0 : index
    %6 = vector.load %arg5[%c0_4, %c1_5, %c0_6, %c0_7] : memref<1x4x2x128xf32, #tpu.memory_space<vmem>>, vector<1x1x2x128xf32>
    %7 = vector.shape_cast %6 : vector<1x1x2x128xf32> to vector<2x128xf32>
    %8 = vector.broadcast %5 : f32 to vector<2x128xf32>
    %9 = arith.mulf %8, %7 : vector<2x128xf32>
    %10 = arith.addf %4, %9 : vector<2x128xf32>
    %c2 = arith.constant 2 : index
    %11 = memref.load %arg2[%c2] : memref<16xf32, #tpu.memory_space<smem>>
    %c0_8 = arith.constant 0 : index
    %c2_9 = arith.constant 2 : index
    %c0_10 = arith.constant 0 : index
    %c0_11 = arith.constant 0 : index
    %12 = vector.load %arg5[%c0_8, %c2_9, %c0_10, %c0_11] : memref<1x4x2x128xf32, #tpu.memory_space<vmem>>, vector<1x1x2x128xf32>
    %13 = vector.shape_cast %12 : vector<1x1x2x128xf32> to vector<2x128xf32>
    %14 = vector.broadcast %11 : f32 to vector<2x128xf32>
    %15 = arith.mulf %14, %13 : vector<2x128xf32>
    %16 = arith.addf %10, %15 : vector<2x128xf32>
    %c3 = arith.constant 3 : index
    %17 = memref.load %arg2[%c3] : memref<16xf32, #tpu.memory_space<smem>>
    %c0_12 = arith.constant 0 : index
    %c3_13 = arith.constant 3 : index
    %c0_14 = arith.constant 0 : index
    %c0_15 = arith.constant 0 : index
    %18 = vector.load %arg5[%c0_12, %c3_13, %c0_14, %c0_15] : memref<1x4x2x128xf32, #tpu.memory_space<vmem>>, vector<1x1x2x128xf32>
    %19 = vector.shape_cast %18 : vector<1x1x2x128xf32> to vector<2x128xf32>
    %20 = vector.broadcast %17 : f32 to vector<2x128xf32>
    %21 = arith.mulf %20, %19 : vector<2x128xf32>
    %22 = arith.addf %16, %21 : vector<2x128xf32>
    %c0_16 = arith.constant 0 : index
    %23 = memref.load %arg3[%c0_16] : memref<4xf32, #tpu.memory_space<smem>>
    %24 = vector.broadcast %23 : f32 to vector<2x128xf32>
    %25 = arith.addf %22, %24 : vector<2x128xf32>
    %cst = arith.constant 0.000000e+00 : f32
    %26 = vector.broadcast %cst : f32 to vector<2x128xf32>
    %27 = arith.cmpf ogt, %25, %26 : vector<2x128xf32>
    %c0_17 = arith.constant 0 : index
    %28 = memref.load %arg4[%c0_17] : memref<4xf32, #tpu.memory_space<smem>>
    %29 = vector.broadcast %28 : f32 to vector<2x128xf32>
    %30 = arith.mulf %29, %25 : vector<2x128xf32>
    %31 = arith.select %27, %25, %30 : vector<2x128xi1>, vector<2x128xf32>
    %c0_18 = arith.constant 0 : index
    %c0_19 = arith.constant 0 : index
    %c0_20 = arith.constant 0 : index
    %c0_21 = arith.constant 0 : index
    %32 = vector.load %arg6[%c0_18, %c0_19, %c0_20, %c0_21] : memref<1x4x2x128xf32, #tpu.memory_space<vmem>>, vector<1x1x2x128xf32>
    %33 = vector.shape_cast %32 : vector<1x1x2x128xf32> to vector<2x128xf32>
    %34 = vector.shape_cast %31 : vector<2x128xf32> to vector<1x1x2x128xf32>
    tpu.vector_store %arg6[%c0_18, %c0_19, %c0_20, %c0_21], %34 {strides = array<i32>} : memref<1x4x2x128xf32, #tpu.memory_space<vmem>>, vector<1x1x2x128xf32>,
    %c4 = arith.constant 4 : index
    %35 = memref.load %arg2[%c4] : memref<16xf32, #tpu.memory_space<smem>>
    %c0_22 = arith.constant 0 : index
    %c0_23 = arith.constant 0 : index
    %c0_24 = arith.constant 0 : index
    %c0_25 = arith.constant 0 : index
    %36 = vector.load %arg5[%c0_22, %c0_23, %c0_24, %c0_25] : memref<1x4x2x128xf32, #tpu.memory_space<vmem>>, vector<1x1x2x128xf32>
    %37 = vector.shape_cast %36 : vector<1x1x2x128xf32> to vector<2x128xf32>
    %38 = vector.broadcast %35 : f32 to vector<2x128xf32>
    %39 = arith.mulf %38, %37 : vector<2x128xf32>
    %c5 = arith.constant 5 : index
    %40 = memref.load %arg2[%c5] : memref<16xf32, #tpu.memory_space<smem>>
    %c0_26 = arith.constant 0 : index
    %c1_27 = arith.constant 1 : index
    %c0_28 = arith.constant 0 : index
    %c0_29 = arith.constant 0 : index
    %41 = vector.load %arg5[%c0_26, %c1_27, %c0_28, %c0_29] : memref<1x4x2x128xf32, #tpu.memory_space<vmem>>, vector<1x1x2x128xf32>
    %42 = vector.shape_cast %41 : vector<1x1x2x128xf32> to vector<2x128xf32>
    %43 = vector.broadcast %40 : f32 to vector<2x128xf32>
    %44 = arith.mulf %43, %42 : vector<2x128xf32>
    %45 = arith.addf %39, %44 : vector<2x128xf32>
    %c6 = arith.constant 6 : index
    %46 = memref.load %arg2[%c6] : memref<16xf32, #tpu.memory_space<smem>>
    %c0_30 = arith.constant 0 : index
    %c2_31 = arith.constant 2 : index
    %c0_32 = arith.constant 0 : index
    %c0_33 = arith.constant 0 : index
    %47 = vector.load %arg5[%c0_30, %c2_31, %c0_32, %c0_33] : memref<1x4x2x128xf32, #tpu.memory_space<vmem>>, vector<1x1x2x128xf32>
    %48 = vector.shape_cast %47 : vector<1x1x2x128xf32> to vector<2x128xf32>
    %49 = vector.broadcast %46 : f32 to vector<2x128xf32>
    %50 = arith.mulf %49, %48 : vector<2x128xf32>
    %51 = arith.addf %45, %50 : vector<2x128xf32>
    %c7 = arith.constant 7 : index
    %52 = memref.load %arg2[%c7] : memref<16xf32, #tpu.memory_space<smem>>
    %c0_34 = arith.constant 0 : index
    %c3_35 = arith.constant 3 : index
    %c0_36 = arith.constant 0 : index
    %c0_37 = arith.constant 0 : index
    %53 = vector.load %arg5[%c0_34, %c3_35, %c0_36, %c0_37] : memref<1x4x2x128xf32, #tpu.memory_space<vmem>>, vector<1x1x2x128xf32>
    %54 = vector.shape_cast %53 : vector<1x1x2x128xf32> to vector<2x128xf32>
    %55 = vector.broadcast %52 : f32 to vector<2x128xf32>
    %56 = arith.mulf %55, %54 : vector<2x128xf32>
    %57 = arith.addf %51, %56 : vector<2x128xf32>
    %c1_38 = arith.constant 1 : index
    %58 = memref.load %arg3[%c1_38] : memref<4xf32, #tpu.memory_space<smem>>
    %59 = vector.broadcast %58 : f32 to vector<2x128xf32>
    %60 = arith.addf %57, %59 : vector<2x128xf32>
    %cst_39 = arith.constant 0.000000e+00 : f32
    %61 = vector.broadcast %cst_39 : f32 to vector<2x128xf32>
    %62 = arith.cmpf ogt, %60, %61 : vector<2x128xf32>
    %c1_40 = arith.constant 1 : index
    %63 = memref.load %arg4[%c1_40] : memref<4xf32, #tpu.memory_space<smem>>
    %64 = vector.broadcast %63 : f32 to vector<2x128xf32>
    %65 = arith.mulf %64, %60 : vector<2x128xf32>
    %66 = arith.select %62, %60, %65 : vector<2x128xi1>, vector<2x128xf32>
    %c0_41 = arith.constant 0 : index
    %c1_42 = arith.constant 1 : index
    %c0_43 = arith.constant 0 : index
    %c0_44 = arith.constant 0 : index
    %67 = vector.load %arg6[%c0_41, %c1_42, %c0_43, %c0_44] : memref<1x4x2x128xf32, #tpu.memory_space<vmem>>, vector<1x1x2x128xf32>
    %68 = vector.shape_cast %67 : vector<1x1x2x128xf32> to vector<2x128xf32>
    %69 = vector.shape_cast %66 : vector<2x128xf32> to vector<1x1x2x128xf32>
    tpu.vector_store %arg6[%c0_41, %c1_42, %c0_43, %c0_44], %69 {strides = array<i32>} : memref<1x4x2x128xf32, #tpu.memory_space<vmem>>, vector<1x1x2x128xf32>,
    %c8 = arith.constant 8 : index
    %70 = memref.load %arg2[%c8] : memref<16xf32, #tpu.memory_space<smem>>
    %c0_45 = arith.constant 0 : index
    %c0_46 = arith.constant 0 : index
    %c0_47 = arith.constant 0 : index
    %c0_48 = arith.constant 0 : index
    %71 = vector.load %arg5[%c0_45, %c0_46, %c0_47, %c0_48] : memref<1x4x2x128xf32, #tpu.memory_space<vmem>>, vector<1x1x2x128xf32>
    %72 = vector.shape_cast %71 : vector<1x1x2x128xf32> to vector<2x128xf32>
    %73 = vector.broadcast %70 : f32 to vector<2x128xf32>
    %74 = arith.mulf %73, %72 : vector<2x128xf32>
    %c9 = arith.constant 9 : index
    %75 = memref.load %arg2[%c9] : memref<16xf32, #tpu.memory_space<smem>>
    %c0_49 = arith.constant 0 : index
    %c1_50 = arith.constant 1 : index
    %c0_51 = arith.constant 0 : index
    %c0_52 = arith.constant 0 : index
    %76 = vector.load %arg5[%c0_49, %c1_50, %c0_51, %c0_52] : memref<1x4x2x128xf32, #tpu.memory_space<vmem>>, vector<1x1x2x128xf32>
    %77 = vector.shape_cast %76 : vector<1x1x2x128xf32> to vector<2x128xf32>
    %78 = vector.broadcast %75 : f32 to vector<2x128xf32>
    %79 = arith.mulf %78, %77 : vector<2x128xf32>
    %80 = arith.addf %74, %79 : vector<2x128xf32>
    %c10 = arith.constant 10 : index
    %81 = memref.load %arg2[%c10] : memref<16xf32, #tpu.memory_space<smem>>
    %c0_53 = arith.constant 0 : index
    %c2_54 = arith.constant 2 : index
    %c0_55 = arith.constant 0 : index
    %c0_56 = arith.constant 0 : index
    %82 = vector.load %arg5[%c0_53, %c2_54, %c0_55, %c0_56] : memref<1x4x2x128xf32, #tpu.memory_space<vmem>>, vector<1x1x2x128xf32>
    %83 = vector.shape_cast %82 : vector<1x1x2x128xf32> to vector<2x128xf32>
    %84 = vector.broadcast %81 : f32 to vector<2x128xf32>
    %85 = arith.mulf %84, %83 : vector<2x128xf32>
    %86 = arith.addf %80, %85 : vector<2x128xf32>
    %c11 = arith.constant 11 : index
    %87 = memref.load %arg2[%c11] : memref<16xf32, #tpu.memory_space<smem>>
    %c0_57 = arith.constant 0 : index
    %c3_58 = arith.constant 3 : index
    %c0_59 = arith.constant 0 : index
    %c0_60 = arith.constant 0 : index
    %88 = vector.load %arg5[%c0_57, %c3_58, %c0_59, %c0_60] : memref<1x4x2x128xf32, #tpu.memory_space<vmem>>, vector<1x1x2x128xf32>
    %89 = vector.shape_cast %88 : vector<1x1x2x128xf32> to vector<2x128xf32>
    %90 = vector.broadcast %87 : f32 to vector<2x128xf32>
    %91 = arith.mulf %90, %89 : vector<2x128xf32>
    %92 = arith.addf %86, %91 : vector<2x128xf32>
    %c2_61 = arith.constant 2 : index
    %93 = memref.load %arg3[%c2_61] : memref<4xf32, #tpu.memory_space<smem>>
    %94 = vector.broadcast %93 : f32 to vector<2x128xf32>
    %95 = arith.addf %92, %94 : vector<2x128xf32>
    %cst_62 = arith.constant 0.000000e+00 : f32
    %96 = vector.broadcast %cst_62 : f32 to vector<2x128xf32>
    %97 = arith.cmpf ogt, %95, %96 : vector<2x128xf32>
    %c2_63 = arith.constant 2 : index
    %98 = memref.load %arg4[%c2_63] : memref<4xf32, #tpu.memory_space<smem>>
    %99 = vector.broadcast %98 : f32 to vector<2x128xf32>
    %100 = arith.mulf %99, %95 : vector<2x128xf32>
    %101 = arith.select %97, %95, %100 : vector<2x128xi1>, vector<2x128xf32>
    %c0_64 = arith.constant 0 : index
    %c2_65 = arith.constant 2 : index
    %c0_66 = arith.constant 0 : index
    %c0_67 = arith.constant 0 : index
    %102 = vector.load %arg6[%c0_64, %c2_65, %c0_66, %c0_67] : memref<1x4x2x128xf32, #tpu.memory_space<vmem>>, vector<1x1x2x128xf32>
    %103 = vector.shape_cast %102 : vector<1x1x2x128xf32> to vector<2x128xf32>
    %104 = vector.shape_cast %101 : vector<2x128xf32> to vector<1x1x2x128xf32>
    tpu.vector_store %arg6[%c0_64, %c2_65, %c0_66, %c0_67], %104 {strides = array<i32>} : memref<1x4x2x128xf32, #tpu.memory_space<vmem>>, vector<1x1x2x128xf32>,
    %c12 = arith.constant 12 : index
    %105 = memref.load %arg2[%c12] : memref<16xf32, #tpu.memory_space<smem>>
    %c0_68 = arith.constant 0 : index
    %c0_69 = arith.constant 0 : index
    %c0_70 = arith.constant 0 : index
    %c0_71 = arith.constant 0 : index
    %106 = vector.load %arg5[%c0_68, %c0_69, %c0_70, %c0_71] : memref<1x4x2x128xf32, #tpu.memory_space<vmem>>, vector<1x1x2x128xf32>
    %107 = vector.shape_cast %106 : vector<1x1x2x128xf32> to vector<2x128xf32>
    %108 = vector.broadcast %105 : f32 to vector<2x128xf32>
    %109 = arith.mulf %108, %107 : vector<2x128xf32>
    %c13 = arith.constant 13 : index
    %110 = memref.load %arg2[%c13] : memref<16xf32, #tpu.memory_space<smem>>
    %c0_72 = arith.constant 0 : index
    %c1_73 = arith.constant 1 : index
    %c0_74 = arith.constant 0 : index
    %c0_75 = arith.constant 0 : index
    %111 = vector.load %arg5[%c0_72, %c1_73, %c0_74, %c0_75] : memref<1x4x2x128xf32, #tpu.memory_space<vmem>>, vector<1x1x2x128xf32>
    %112 = vector.shape_cast %111 : vector<1x1x2x128xf32> to vector<2x128xf32>
    %113 = vector.broadcast %110 : f32 to vector<2x128xf32>
    %114 = arith.mulf %113, %112 : vector<2x128xf32>
    %115 = arith.addf %109, %114 : vector<2x128xf32>
    %c14 = arith.constant 14 : index
    %116 = memref.load %arg2[%c14] : memref<16xf32, #tpu.memory_space<smem>>
    %c0_76 = arith.constant 0 : index
    %c2_77 = arith.constant 2 : index
    %c0_78 = arith.constant 0 : index
    %c0_79 = arith.constant 0 : index
    %117 = vector.load %arg5[%c0_76, %c2_77, %c0_78, %c0_79] : memref<1x4x2x128xf32, #tpu.memory_space<vmem>>, vector<1x1x2x128xf32>
    %118 = vector.shape_cast %117 : vector<1x1x2x128xf32> to vector<2x128xf32>
    %119 = vector.broadcast %116 : f32 to vector<2x128xf32>
    %120 = arith.mulf %119, %118 : vector<2x128xf32>
    %121 = arith.addf %115, %120 : vector<2x128xf32>
    %c15 = arith.constant 15 : index
    %122 = memref.load %arg2[%c15] : memref<16xf32, #tpu.memory_space<smem>>
    %c0_80 = arith.constant 0 : index
    %c3_81 = arith.constant 3 : index
    %c0_82 = arith.constant 0 : index
    %c0_83 = arith.constant 0 : index
    %123 = vector.load %arg5[%c0_80, %c3_81, %c0_82, %c0_83] : memref<1x4x2x128xf32, #tpu.memory_space<vmem>>, vector<1x1x2x128xf32>
    %124 = vector.shape_cast %123 : vector<1x1x2x128xf32> to vector<2x128xf32>
    %125 = vector.broadcast %122 : f32 to vector<2x128xf32>
    %126 = arith.mulf %125, %124 : vector<2x128xf32>
    %127 = arith.addf %121, %126 : vector<2x128xf32>
    %c3_84 = arith.constant 3 : index
    %128 = memref.load %arg3[%c3_84] : memref<4xf32, #tpu.memory_space<smem>>
    %129 = vector.broadcast %128 : f32 to vector<2x128xf32>
    %130 = arith.addf %127, %129 : vector<2x128xf32>
    %cst_85 = arith.constant 0.000000e+00 : f32
    %131 = vector.broadcast %cst_85 : f32 to vector<2x128xf32>
    %132 = arith.cmpf ogt, %130, %131 : vector<2x128xf32>
    %c3_86 = arith.constant 3 : index
    %133 = memref.load %arg4[%c3_86] : memref<4xf32, #tpu.memory_space<smem>>
    %134 = vector.broadcast %133 : f32 to vector<2x128xf32>
    %135 = arith.mulf %134, %130 : vector<2x128xf32>
    %136 = arith.select %132, %130, %135 : vector<2x128xi1>, vector<2x128xf32>
    %c0_87 = arith.constant 0 : index
    %c3_88 = arith.constant 3 : index
    %c0_89 = arith.constant 0 : index
    %c0_90 = arith.constant 0 : index
    %137 = vector.load %arg6[%c0_87, %c3_88, %c0_89, %c0_90] : memref<1x4x2x128xf32, #tpu.memory_space<vmem>>, vector<1x1x2x128xf32>
    %138 = vector.shape_cast %137 : vector<1x1x2x128xf32> to vector<2x128xf32>
    %139 = vector.shape_cast %136 : vector<2x128xf32> to vector<1x1x2x128xf32>
    tpu.vector_store %arg6[%c0_87, %c3_88, %c0_89, %c0_90], %139 {strides = array<i32>} : memref<1x4x2x128xf32, #tpu.memory_space<vmem>>, vector<1x1x2x128xf32>,
    return
  }
  func.func @transform_0(%arg0: i32, %arg1: i32) -> i32 {
    %c0_i32 = arith.constant 0 : i32
    %c0_i32_0 = arith.constant 0 : i32
    return %c0_i32 : i32
  }
  func.func @transform_1(%arg0: i32, %arg1: i32) -> i32 {
    %c0_i32 = arith.constant 0 : i32
    %c0_i32_0 = arith.constant 0 : i32
    return %c0_i32 : i32
  }
  func.func @transform_2(%arg0: i32, %arg1: i32) -> i32 {
    %c0_i32 = arith.constant 0 : i32
    %c0_i32_0 = arith.constant 0 : i32
    return %c0_i32 : i32
  }
  func.func @transform_3(%arg0: i32, %arg1: i32) -> (i32, i32, i32, i32) {
    %c0_i32 = arith.constant 0 : i32
    %c0_i32_0 = arith.constant 0 : i32
    %c0_i32_1 = arith.constant 0 : i32
    return %arg0, %c0_i32, %arg1, %c0_i32_0 : i32, i32, i32, i32
  }
  func.func @transform_4(%arg0: i32, %arg1: i32) -> (i32, i32, i32, i32) {
    %c0_i32 = arith.constant 0 : i32
    %c0_i32_0 = arith.constant 0 : i32
    %c0_i32_1 = arith.constant 0 : i32
    return %arg0, %c0_i32, %arg1, %c0_i32_0 : i32, i32, i32, i32
  }
}

</mosaic_0001>

<bundles_post_ra>
// kernel: tpu_custom_call.1
= control target key start
LH: loop header
LB: loop body
LE: loop exit
PB: predicated region body
PF: predicated region fallthrough
CT: control target
= control target key end

     0   :  { %s1211_s0 = inlined_call_operand.hbm [shape: f32[16], index: 0, kind: input, shape index: {}]   ;;  %s1212_s1 = inlined_call_operand.vmem [shape: f32[4], index: 1, kind: input, shape index: {}]   ;;  %s1213_s2 = inlined_call_operand.vmem [shape: f32[4], index: 2, kind: input, shape index: {}]   ;;  %s1214_s3 = inlined_call_operand.hbm [shape: f32[2,4,2,128], index: 3, kind: input, shape index: {}]   ;;  %s1215_s4 = inlined_call_operand.hbm [shape: f32[2,4,2,128], index: 4, kind: output, shape index: {}]  }
   0x1   :  { %1221 = sst [smem:[#allocation17_spill]] %s1211_s0 }
   0x2   :  { %9 = vsyncpa [#allocation5], 0 }
   0x3   :  { %10 = vsyncpa [#allocation6], 0 }
   0x4   :  { %11 = vsyncpa [#allocation9], 0 }
   0x5   :  { %12 = vsyncpa [#allocation3], 0 }
   0x6   :  { %14 = vsyncpa [#allocation3 + $0x1], 0 }
   0x7   :  { %15 = vsyncpa [#allocation4], 0 }
   0x8   :  { %17 = vsyncpa [#allocation4 + $0x1], 0  ;;  %s882_s15 = smov 0   ;;  %s884_s16 = smov 0  }
   0x9   :  { %s886_s17 = smov 0   ;;  %s888_s18 = smov 0  }
   0xa   :  { %s890_s19 = smov 0   ;;  %s892_s20 = smov 0  }
   0xb LB: > { %s523_s21 = sadd.s32 4294967295, %s846_s20   ;;  %s524_s22 = sadd.s32 4294967294, %s846_s20   ;;  %s846_s20 = sphi %s892_s20, %s23_s20   ;;  %s842_s19 = sphi %s890_s19, %s1242_s19   ;;  %s838_s18 = sphi %s888_s18, %s1241_s18   ;;  %s834_s17 = sphi %s886_s17, %s1240_s17   ;;  %s830_s16 = sphi %s884_s16, %s1239_s16   ;;  %s826_s15 = sphi %s882_s15, %s1238_s15  }
   0xc   : > { %p120_p0 = scmp.ne.s32.totalorder %s830_s16, %s826_s15  ;;  %p916_p1 = scmp.eq.s32.totalorder %s523_s21, 0 }
   0xd   : > { %p920_p2 = scmp.eq.s32.totalorder %s523_s21, 1  ;;  %p152_p3 = scmp.eq.s32.totalorder %s524_s22, 1 }
   0xe   : > { %s1222_s23 = scalar_select %p916_p1, 1, 0 }
   0xf   : > { %p926_p4 = por %p916_p1, %p120_p0  ;;  %p525_p5 = scmp.ge.s32.totalorder %s846_s20, 1 }
  0x10   : > { %p931_p6 = por %p152_p3, %p120_p0  ;;  %p159_p7 = scmp.lt.s32.totalorder %s846_s20, 3 }
  0x11   : > { %s1224_s25 = scalar_select %p926_p4, 1, 0 }
  0x12   : > { %s1225_s26 = scalar_select %p931_p6, 1, 0 }
  0x13   : > { %p936_p8 = pnand %p525_p5, %p159_p7  ;;  %s181_s30 = sshll.u32 %s1212_s1, 4  ;;  %s182_s30 = int_to_ptr.vmem [resolvable:$true] %s181_s30 }
  0x14   : > { %s192_s7 = sshll.u32 %s1213_s2, 4  ;;  %s1228_s0 = sld [smem:[#allocation17_spill]]  ;;  %s955_s7 = int_to_ptr.vmem [resolvable:$true] %s192_s7 }
  0x15   : > { %p598_p10 = pneg %p936_p8 }
  0x17   : > { %p951_p11 = pnand %p598_p10, %p916_p1 }
  0x19   : > { %p681_p13 = pneg %p951_p11 }
  0x1a   : > { %s679_s11 = scalar_lea.hbm %s1228_s0, 16 }
  0x1b   : > { %p680_p12 = scmp.ne.s32.totalorder %s1228_s0, %s679_s11  ;;  %p686_p5 = scmp.lt.u32.totalorder %s679_s11, %s1228_s0 }
  0x1d   : > { %p682_p0 = pnand %p681_p13, %p680_p12 }
  0x1f   : > { %p683_p3 = pneg %p682_p0 }
  0x21   : > { %p688_p7 = pnand %p686_p5, %p683_p3 }
  0x23   : > { %691 = shalt.err (!%p688_p7)
}
  0x24   : > { %s848_s22 = smov [#allocation2]   ;;  %s692_s5 = scalar_lea.vmem %s182_s30, 16 }
  0x25   : > { %601 = dma.hbm_to_smem (!%p951_p11), %s1228_s0, 16, %s848_s22, [#allocation5]  }
  0x26   : > { %p693_p10 = scmp.ne.s32.totalorder %s182_s30, %s692_s5  ;;  %p700_p9 = scmp.lt.s32.totalorder %s182_s30, %s182_s30 }
  0x27   : > { %p701_p6 = scmp.lt.s32.totalorder %s692_s5, %s692_s5 }
  0x28   : > { %p695_p12 = pnand %p693_p10, %p681_p13 }
  0x29   : > { %p702_p4 = por %p701_p6, %p700_p9 }
  0x2a   : > { %p696_p0 = pneg %p695_p12 }
  0x2c   : > { %p703_p1 = pnand %p702_p4, %p696_p0 }
  0x2e   : > { %706 = shalt.err (!%p703_p1)
}
  0x2f   : > { %s849_s6 = smov [#allocation7]   ;;  %s707_s9 = scalar_lea.vmem %s955_s7, 16 }
  0x30   : > { %604 = dma.vmem_to_smem (!%p951_p11), %s182_s30, 16, %s849_s6, [#allocation6]  }
  0x31   : > { %p708_p3 = scmp.ne.s32.totalorder %s955_s7, %s707_s9  ;;  %p715_p10 = scmp.lt.s32.totalorder %s955_s7, %s955_s7 }
  0x32   : > { %p716_p12 = scmp.lt.s32.totalorder %s707_s9, %s707_s9 }
  0x33   : > { %p710_p5 = pnand %p708_p3, %p681_p13 }
  0x34   : > { %p717_p6 = por %p716_p12, %p715_p10 }
  0x35   : > { %p711_p7 = pneg %p710_p5 }
  0x37   : > { %p718_p4 = pnand %p717_p6, %p711_p7 }
  0x39   : > { %721 = shalt.err (!%p718_p4)
}
  0x3a   : > { %s850_s10 = smov [#allocation8]   ;;  %s35_s30 = sadd.s32 1, %s842_s19 }
  0x3b   : > { %607 = dma.vmem_to_smem (!%p951_p11), %s955_s7, 16, %s850_s10, [#allocation9]  }
  0x3c   : > { %p37_p1 = scmp.ge.s32.totalorder %s35_s30, 2  ;;  %s107_s11 = sadd.s32 1, %s834_s17 }
  0x3d   : > { %p114_p9 = scmp.ne.s32.totalorder %s834_s17, %s830_s16  ;;  %p115_p13 = scmp.eq.s32.totalorder %s846_s20, 0 }
  0x3e   : > { %s1244_s30 = smov (%p37_p1, %s35_s30), 0  ;;  %p619_p11 = scmp.lt.s32.totalorder %s846_s20, 2 }
  0x3f   : > { %p998_p0 = por %p115_p13, %p114_p9  ;;  %p1004_p3 = por %p920_p2, %p114_p9 }
  0x40   : > { %s102_s13 = ssub.s32 %s842_s19, %s1244_s30  ;;  %s203_s7 = sand.u32 1, %s834_s17  }
  0x41   : > { %s1230_s12 = scalar_select %p1004_p3, 1, 0 }
  0x42   : > { %p105_p5 = scmp.eq.s32.totalorder %s102_s13, 0  ;;  %s530_s14 = sshll.u32 %s203_s7, 3 }
  0x43   : > { %s580_s22 = sshll.u32 %s842_s19, 7  ;;  %s207_s24 = scalar_lea.vmem [#allocation10], %s530_s14 }
  0x44   : > { %s1013_s21 = scalar_select %p105_p5, %s834_s17, %s107_s11  }
  0x45   : > { %s1019_s5 = scalar_lea.hbm %s1214_s3, %s580_s22  ;;  %s215_s6 = sshll.u32 %s207_s24, 4  ;;  %s1021_s6 = int_to_ptr.vmem [resolvable:$true] %s215_s6 }
  0x46   : > { %p1025_p2 = pnand %p619_p11, %p998_p0  ;;  %s1029_s10 = scalar_lea.sflag [#allocation3], %s203_s7 }
  0x47   : > { %s722_s11 = scalar_lea.hbm %s1019_s5, 128  ;;  %s727_s8 = scalar_lea.hbm %s1214_s3, 256 }
  0x48   : > { %p723_p7 = scmp.ne.s32.totalorder %s1019_s5, %s722_s11  ;;  %p724_p10 = pneg %p1025_p2 }
  0x49   : > { %p728_p4 = scmp.lt.u32.totalorder %s1019_s5, %s1214_s3  ;;  %p729_p1 = scmp.lt.u32.totalorder %s727_s8, %s722_s11 }
  0x4a   : > { %p725_p12 = pnand %p724_p10, %p723_p7  ;;  %p731_p13 = scmp.lt.u32.totalorder %s722_s11, %s1019_s5 }
  0x4b   : > { %p730_p9 = por %p729_p1, %p728_p4 }
  0x4c   : > { %p726_p6 = pneg %p725_p12 }
  0x4d   : > { %p732_p0 = por %p731_p13, %p730_p9 }
  0x4f   : > { %p733_p11 = pnand %p732_p0, %p726_p6 }
  0x51   : > { %736 = shalt.err (!%p733_p11)
}
  0x52   : > { %s737_s7 = scalar_lea.vmem %s1021_s6, 128  ;;  %s851_s29 = smov [#allocation10]  }
  0x53   : > { %p738_p5 = scmp.ne.s32.totalorder %s1021_s6, %s737_s7  ;;  %s742_s24 = sshll.u32 %s851_s29, 4  ;;  %s743_s24 = int_to_ptr.vmem [resolvable:$false] %s742_s24 }
  0x54   : > { %s744_s13 = scalar_lea.vmem %s743_s24, 256  ;;  %p745_p3 = scmp.lt.s32.totalorder %s1021_s6, %s743_s24 }
  0x55   : > { %p740_p7 = pnand %p738_p5, %p724_p10  ;;  %p746_p4 = scmp.lt.s32.totalorder %s744_s13, %s737_s7 }
  0x57   : > { %p741_p12 = pneg %p740_p7  ;;  %p747_p1 = por %p746_p4, %p745_p3 }
  0x59   : > { %p748_p9 = pnand %p747_p1, %p741_p12 }
  0x5b   : > { %751 = shalt.err (!%p748_p9)
}
  0x5c   : > { %s852_s11 = smov 32   ;;  %s853_s14 = smov 2  }
  0x5d   : > { %611 = dma.hbm_to_vmem [thread:$0]  (!%p1025_p2), %s1019_s5, 128, %s1021_s6, %s1029_s10, %s852_s11, %s852_s11, %s853_s14  }
  0x5e   : > { %227 = sbr.rel (%p936_p8) target bundleno = 157 (0x9d), region = 36  ;;  %p1232_p10 = scmp.ne.s32.totalorder (!%p936_p8), %s1222_s23, 0 }
  0x65   : > { %805 = dma.done.wait (%p1232_p10), [#allocation5], 16  }
  0x66   : > { %807 = vsyncadd (%p1232_p10), [#allocation5], 4294967280 }
  0x67   : > { %809 = dma.done.wait (%p1232_p10), [#allocation6], 16  }
  0x68   : > { %811 = vsyncadd (%p1232_p10), [#allocation6], 4294967280 }
  0x69   : > { %813 = dma.done.wait (%p1232_p10), [#allocation9], 16  }
  0x6a   : > { %815 = vsyncadd (%p1232_p10), [#allocation9], 4294967280  ;;  %s1072_s27 = sand.u32 1, %s830_s16   ;;  %p1233_p8 = scmp.ne.s32.totalorder %s1224_s25, 0 }
  0x6b   : > { %s1220_s5 = sshll.u32 %s1072_s27, 3  ;;  %s242_s6 = scalar_lea.sflag [#allocation3], %s1072_s27 }
  0x6c   : > { %s1078_s9 = scalar_lea.vmem [#allocation10], %s1220_s5 }
  0x6d   : > { %817 = dma.done.wait (%p1233_p8), %s242_s6, 128  }
  0x6e   : > { %819 = vsyncadd (%p1233_p8), %s242_s6, 4294967168 }
  0x6f   : > { %250 = sfence }
  0x70   : > { %s271_s23 = sld [smem:[#allocation2]]  ;;  %s539_s10 = sld [smem:[#allocation2 + $0x1]]  ;;  %v272_v0 = vld [vmem:[%s1078_s9] sm:$0x3]  ;;  %v540_v1 = vld [vmem:[%s1078_s9 + $0x2] sm:$0x3] }
  0x71   : > { %s541_s8 = sld [smem:[#allocation2 + $0x2]]  ;;  %s543_s22 = sld [smem:[#allocation2 + $0x3]]  ;;  %v542_v2 = vld [vmem:[%s1078_s9 + $0x4] sm:$0x3]  ;;  %v544_v7 = vld [vmem:[%s1078_s9 + $0x6] sm:$0x3] }
  0x72   : > { %s1084_s28 = sld [smem:[#allocation7]]  ;;  %s545_s7 = sld [smem:[#allocation2 + $0x4]]  ;;  %v303_v11 = vld [vmem:[%s1078_s9] sm:$0x3]  ;;  %v547_v12 = vld [vmem:[%s1078_s9 + $0x2] sm:$0x3] }
  0x73   : > { %s1089_s29 = sld [smem:[#allocation8]]  ;;  %s1091_s25 = sld [smem:[#allocation2 + $0x5]]  ;;  %v549_v16 = vld [vmem:[%s1078_s9 + $0x4] sm:$0x3]  ;;  %v551_v17 = vld [vmem:[%s1078_s9 + $0x6] sm:$0x3] }
  0x74   : > { %s1093_s24 = sld [smem:[#allocation2 + $0x6]]  ;;  %s1095_s13 = sld [smem:[#allocation2 + $0x7]]  ;;  %v332_v21 = vld [vmem:[%s1078_s9] sm:$0x3]  ;;  %v557_v26 = vld [vmem:[%s1078_s9 + $0x2] sm:$0x3] }
  0x75   : > { %s1098_s11 = sld [smem:[#allocation7 + $0x1]]  ;;  %s1103_s6 = sld [smem:[#allocation2 + $0x8]]  ;;  %v559_v31 = vld [vmem:[%s1078_s9 + $0x4] sm:$0x3]  ;;  %v561_v36 = vld [vmem:[%s1078_s9 + $0x6] sm:$0x3] }
  0x76   : > { %v273_v3 = vstv %s271_s23  ;;  %v278_v5 = vstv %s539_s10  ;;  %s1100_s14 = sld [smem:[#allocation8 + $0x1]]  ;;  %s1108_s10 = sld [smem:[#allocation2 + $0xa]]  ;;  %v361_v41 = vld [vmem:[%s1078_s9] sm:$0x3]  ;;  %v567_v50 = vld [vmem:[%s1078_s9 + $0x2] sm:$0x3] }
  0x77   : > { %v274_v4 = vmul.f32 %v273_v3, %v272_v0  ;;  %v284_v6 = vstv %s541_s8  ;;  %v279_v8 = vmul.f32 %v540_v1, %v278_v5  ;;  %v290_v10 = vstv %s543_s22  ;;  %s1105_s23 = sld [smem:[#allocation2 + $0x9]]  ;;  %s1110_s8 = sld [smem:[#allocation2 + $0xb]]  ;;  %v569_v51 = vld [vmem:[%s1078_s9 + $0x4] sm:$0x3]  ;;  %v571_v58 = vld [vmem:[%s1078_s9 + $0x6] sm:$0x3] }
  0x78   : > { %v285_v9 = vmul.f32 %v542_v2, %v284_v6  ;;  %v291_v14 = vmul.f32 %v544_v7, %v290_v10  ;;  %v304_v15 = vstv %s545_s7  ;;  %s1114_s22 = sld [smem:[#allocation7 + $0x2]]  ;;  %v294_v18 = vstv %s1084_s28  ;;  %s1119_s5 = sld [smem:[#allocation2 + $0xc]] }
  0x79   : > { %v280_v13 = vadd.f32 %v279_v8, %v274_v4  ;;  %v305_v19 = vmul.f32 %v304_v15, %v303_v11  ;;  %v308_v20 = vstv %s1091_s25  ;;  %s1121_s0 = sld [smem:[#allocation2 + $0xd]]  ;;  %s1126_s7 = sld [smem:[#allocation2 + $0xe]]  ;;  %v298_v27 = vstv %s1089_s29 }
  0x7a   : > { %v309_v23 = vmul.f32 %v547_v12, %v308_v20  ;;  %v313_v24 = vstv %s1093_s24  ;;  %v318_v25 = vstv %s1095_s13  ;;  %s1128_s28 = sld [smem:[#allocation2 + $0xf]]  ;;  %s1133_s25 = sld [smem:[#allocation8 + $0x2]] }
  0x7b   : > { %v286_v22 = vadd.f32 %v285_v9, %v280_v13  ;;  %v314_v28 = vmul.f32 %v549_v16, %v313_v24  ;;  %v319_v29 = vmul.f32 %v551_v17, %v318_v25  ;;  %v322_v30 = vstv %s1098_s11  ;;  %s1146_s29 = sld [smem:[#allocation7 + $0x3]]  ;;  %s581_s9 = sshll.u32 %s838_s18, 7 }
  0x7c   : > { %v310_v33 = vadd.f32 %v309_v23, %v305_v19  ;;  %v333_v34 = vstv %s1103_s6  ;;  %v342_v39 = vstv %s1108_s10  ;;  %v326_v44 = vstv %s1100_s14  ;;  %s573_s24 = sld [smem:[#allocation8 + $0x3]]  ;;  %s1162_s6 = scalar_lea.hbm %s1215_s4, %s581_s9 }
  0x7d   : > { %v292_v32 = vadd.f32 %v291_v14, %v286_v22  ;;  %v337_v35 = vstv %s1105_s23  ;;  %v334_v37 = vmul.f32 %v333_v34, %v332_v21  ;;  %v347_v40 = vstv %s1110_s8  ;;  %s390_s23 = scalar_lea.sflag [#allocation4], %s1072_s27  ;;  %p1235_p2 = scmp.ne.s32.totalorder %s1230_s12, 0 }
  0x7e   : > { %v338_v38 = vmul.f32 %v557_v26, %v337_v35  ;;  %v315_v43 = vadd.f32 %v314_v28, %v310_v33  ;;  %v343_v45 = vmul.f32 %v559_v31, %v342_v39  ;;  %v348_v47 = vmul.f32 %v561_v36, %v347_v40  ;;  %s854_s18 = smov [#allocation11]  }
  0x7f   : > { %v295_v42 = vadd.f32 %v294_v18, %v292_v32  ;;  %v351_v48 = vstv %s1114_s22  ;;  %v362_v49 = vstv %s1119_s5  ;;  %v366_v56 = vstv %s1121_s0  ;;  %s1234_s5 = sshll.u32 %s1072_s27, 3  ;;  %s756_s8 = sshll.u32 %s854_s18, 4  ;;  %s757_s8 = int_to_ptr.vmem [resolvable:$false] %s756_s8 }
  0x80   : > { %v339_v46 = vadd.f32 %v338_v38, %v334_v37  ;;  %v320_v53 = vadd.f32 %v319_v29, %v315_v43  ;;  %v363_v54 = vmul.f32 %v362_v49, %v361_v41  ;;  %v371_v57 = vstv %s1126_s7  ;;  %s270_s13 = scalar_lea.vmem [#allocation11], %s1234_s5  ;;  %s758_s22 = scalar_lea.vmem %s757_s8, 256 }
  0x81   : > { %vm296_vm0 = vcmp.gt.f32.partialorder %v295_v42, 0.0  ;;  %v299_v52 = vmul.f32 %v298_v27, %v295_v42  ;;  %v376_v59 = vstv %s1128_s28  ;;  %v367_v62 = vmul.f32 %v567_v50, %v366_v56  ;;  %s404_s0 = sshll.u32 %s270_s13, 4  ;;  %s1157_s0 = int_to_ptr.vmem [resolvable:$true] %s404_s0 }
  0x82   : > { %v344_v55 = vadd.f32 %v343_v45, %v339_v46  ;;  %v323_v61 = vadd.f32 %v322_v30, %v320_v53  ;;  %v372_v63 = vmul.f32 %v569_v51, %v371_v57  ;;  %v355_v1 = vstv %s1133_s25  ;;  %s752_s10 = scalar_lea.vmem %s1157_s0, 128  ;;  %p759_p0 = scmp.lt.s32.totalorder %s1157_s0, %s757_s8 }
  0x83   : > { %v300_v60 = vsel %vm296_vm0, %v295_v42, %v299_v52  ;;  %v368_v3 = vadd.f32 %v367_v62, %v363_v54  ;;  %v377_v4 = vmul.f32 %v571_v58, %v376_v59  ;;  %v380_v9 = vstv %s1146_s29  ;;  %p753_p3 = scmp.ne.s32.totalorder %s1157_s0, %s752_s10  ;;  %p760_p11 = scmp.lt.s32.totalorder %s758_s22, %s752_s10 }
  0x84   : > { %301 = vst [vmem:[%s270_s13] sm:$0x3] %v300_v60  ;;  %v349_v0 = vadd.f32 %v348_v47, %v344_v55  ;;  %vm324_vm1 = vcmp.gt.f32.partialorder %v323_v61, 0.0  ;;  %v327_v2 = vmul.f32 %v326_v44, %v323_v61  ;;  %v384_v12 = vstv %s573_s24 }
  0x85   : > { %v373_v7 = vadd.f32 %v372_v63, %v368_v3  ;;  %p754_p6 = pnand %p753_p3, %p1235_p2  ;;  %p761_p5 = por %p760_p11, %p759_p0 }
  0x86   : > { %v352_v5 = vadd.f32 %v351_v48, %v349_v0  ;;  %v328_v6 = vsel %vm324_vm1, %v323_v61, %v327_v2 }
  0x87   : > { %554 = vst [vmem:[%s270_s13 + $0x2] sm:$0x3] %v328_v6  ;;  %v378_v10 = vadd.f32 %v377_v4, %v373_v7  ;;  %p755_p13 = pneg %p754_p6 }
  0x88   : > { %vm353_vm2 = vcmp.gt.f32.partialorder %v352_v5, 0.0  ;;  %v356_v8 = vmul.f32 %v355_v1, %v352_v5 }
  0x89   : > { %v381_v13 = vadd.f32 %v380_v9, %v378_v10  ;;  %p762_p7 = pnand %p761_p5, %p755_p13 }
  0x8a   : > { %v357_v11 = vsel %vm353_vm2, %v352_v5, %v356_v8 }
  0x8b   : > { %564 = vst [vmem:[%s270_s13 + $0x4] sm:$0x3] %v357_v11  ;;  %vm382_vm3 = vcmp.gt.f32.partialorder %v381_v13, 0.0  ;;  %v385_v14 = vmul.f32 %v384_v12, %v381_v13 }
  0x8d   : > { %v386_v15 = vsel %vm382_vm3, %v381_v13, %v385_v14 }
  0x8e   : > { %574 = vst [vmem:[%s270_s13 + $0x6] sm:$0x3] %v386_v15 }
  0x8f   : > { %765 = shalt.err (!%p762_p7)
}
  0x90   : > { %s766_s7 = scalar_lea.hbm %s1162_s6, 128  ;;  %s770_s29 = scalar_lea.hbm %s1215_s4, 256 }
  0x91   : > { %p767_p12 = scmp.ne.s32.totalorder %s1162_s6, %s766_s7  ;;  %p771_p9 = scmp.lt.u32.totalorder %s1162_s6, %s1215_s4 }
  0x92   : > { %p772_p10 = scmp.lt.u32.totalorder %s770_s29, %s766_s7  ;;  %p774_p3 = scmp.lt.u32.totalorder %s766_s7, %s1162_s6 }
  0x93   : > { %p768_p4 = pnand %p767_p12, %p1235_p2 }
  0x94   : > { %p773_p8 = por %p772_p10, %p771_p9 }
  0x95   : > { %p769_p1 = pneg %p768_p4 }
  0x96   : > { %p775_p6 = por %p774_p3, %p773_p8 }
  0x98   : > { %p776_p13 = pnand %p775_p6, %p769_p1 }
  0x9a   : > { %779 = shalt.err (!%p776_p13)
}
  0x9b   : > { %s855_s13 = smov 32   ;;  %s856_s9 = smov 2  }
  0x9c   : > { %596 = dma.vmem_to_hbm [thread:$0]  (%p1235_p2), %s1157_s0, 128, %s1162_s6, %s390_s23, %s855_s13, %s855_s13, %s856_s9  }
  0x9d PF: > { %s419_s11 = sand.u32 1, %s826_s15   ;;  %p1236_p0 = scmp.ne.s32.totalorder %s1225_s26, 0 }
  0x9e   : > { %p1237_p11 = scmp.ge.s32.totalorder %s846_s20, 2  ;;  %s420_s14 = scalar_lea.sflag [#allocation4], %s419_s11 }
  0xa0   : > { %p613_p5 = pnand %p1237_p11, %p1236_p0 }
  0xa2   : > { %821 = dma.done.wait (!%p613_p5), %s420_s14, 128  }
  0xa3   : > { %823 = vsyncadd (!%p613_p5), %s420_s14, 4294967168  ;;  %s23_s20 = sadd.s32 1, %s846_s20   ;;  %s1238_s15 = smov %s830_s16 }
  0xa4   : > { %p20_p7 = scmp.ge.s32.totalorder %s23_s20, 4   ;;  %s1239_s16 = smov %s834_s17 }
  0xa5   : > { %s1240_s17 = smov %s1013_s21  ;;  %s1241_s18 = smov %s842_s19 }
  0xa6   : > { %s1242_s19 = smov %s1244_s30  ;;  %22 = sbr.rel (!%p20_p7) target bundleno = 11 (0xb), region = 101 }
  0xad   :  { %425 = vsyncpa [#allocation3], 1 }
  0xae   :  { %427 = vsyncpa [#allocation3 + $0x1], 1 }
  0xaf   :  { %428 = vsyncpa [#allocation4], 1 }
  0xb0   :  { %430 = vsyncpa [#allocation4 + $0x1], 1 }
  0xb1   :  { %431 = vsyncpa [#allocation5], 1 }
  0xb2   :  { %433 = vsyncpa [#allocation5 + $0x1], 1 }
  0xb3   :  { %434 = vsyncpa [#allocation6], 1 }
  0xb4   :  { %436 = vsyncpa [#allocation6 + $0x1], 1 }
  0xb5   :  { %437 = vsyncpa [#allocation9], 1 }

</bundles_post_ra>
